<compile_context>
chip_gen: v7x
topology: tpu7x:2x2x1
jax: 0.10.0
libtpu: 0.0.40
codegen_flags: <defaults>
</compile_context>

<pallas_src>
import jax
import jax.numpy as jnp
from jax.experimental import pallas as pl
from jax.experimental.pallas import tpu as pltpu


# --------------------------- Pallas kernel ----------------------------------

def _bigru_final_state_kernel(xproj_ref, len_ref, whh_ref, bhh_ref, out_ref):
    """Sequential bidirectional GRU recurrence; writes cat([h_fwd, h_bwd], -1).

    xproj_ref : (S, B, 6H) f32  precomputed x@W_ih + b_ih, gate-major layout
                [r_f r_b z_f z_b n_f n_b]; backward chunks are time-reversed.
    len_ref   : (B, 1) int32    valid sequence lengths.
    whh_ref   : (2H, 6H) f32    block-diagonal recurrent weights (both dirs).
    bhh_ref   : (1, 6H) f32     recurrent bias (both dirs).
    out_ref   : (B, 2H) f32     [h_fwd_final | h_bwd_final].
    """
    S, B, _ = xproj_ref.shape
    H2 = out_ref.shape[1]          # 2H (fwd | bwd)
    H = H2 // 2

    lens = len_ref[...]            # (B, 1) int32

    # Per-column validity window: forward cols update while i < len,
    # backward cols update while i >= S - len (i.e. timestep S-1-i < len).
    col = jax.lax.broadcasted_iota(jnp.int32, (B, H2), 1)
    is_fwd = col < H
    lower = jnp.where(is_fwd, jnp.int32(0), S - lens)     # (B, 2H)
    upper = jnp.where(is_fwd, lens, jnp.int32(S))         # (B, 2H)

    whh = whh_ref[...]             # (2H, 6H)
    bhh = bhh_ref[...]             # (1, 6H)

    def step(i, h):                # h: (B, 2H) = [h_f | h_b]
        xg = xproj_ref[i]          # (B, 6H) — dynamic index on leading axis
        hg = jnp.dot(h, whh, preferred_element_type=jnp.float32) + bhh
        # lane-aligned 2H-wide gate chunks (both directions at once)
        r = jax.nn.sigmoid(xg[:, 0:H2] + hg[:, 0:H2])
        z = jax.nn.sigmoid(xg[:, H2:2 * H2] + hg[:, H2:2 * H2])
        n = jnp.tanh(xg[:, 2 * H2:3 * H2] + r * hg[:, 2 * H2:3 * H2])
        h_new = (1.0 - z) * n + z * h
        mask = jnp.logical_and(i >= lower, i < upper)
        return jnp.where(mask, h_new, h)

    h0 = jnp.zeros((B, H2), jnp.float32)
    out_ref[...] = jax.lax.fori_loop(0, S, step, h0)


def _bigru_head(xproj, lens2d, whh_big, bhh_big):
    S, B, G = xproj.shape
    H2 = G // 3
    vmem = pl.BlockSpec(memory_space=pltpu.MemorySpace.VMEM)
    return pl.pallas_call(
        _bigru_final_state_kernel,
        out_shape=jax.ShapeDtypeStruct((B, H2), jnp.float32),
        in_specs=[vmem, vmem, vmem, vmem],
        out_specs=vmem,
    )(xproj, lens2d, whh_big, bhh_big)


# ----------------------------- jitted wrapper --------------------------------

@jax.jit
def encoder_forward(params, inputs, lengths):
    """Embedding + packed bidirectional GRU; returns (B, 2H) = cat(hn[0], hn[1])."""
    H = params["w_hh_f"].shape[1]

    # nn.Embedding lookup (glue; see TODO above).
    emb = jnp.take(params["emb"], inputs, axis=0)                    # (B, S, E)
    B, S, _ = emb.shape
    emb_r = jnp.flip(emb, axis=1)                                    # time-reversed

    # Input projections for all timesteps / both directions (time-parallel).
    # PyTorch gate order inside 3H is [r, z, n].
    pf = jnp.einsum("bse,ge->bsg", emb, params["w_ih_f"]) + params["b_ih_f"]
    pb = jnp.einsum("bse,ge->bsg", emb_r, params["w_ih_b"]) + params["b_ih_b"]

    # Gate-major layout: [r_f r_b | z_f z_b | n_f n_b]  (each chunk H wide).
    xproj = jnp.concatenate(
        [pf[..., 0:H], pb[..., 0:H],
         pf[..., H:2 * H], pb[..., H:2 * H],
         pf[..., 2 * H:3 * H], pb[..., 2 * H:3 * H]], axis=-1)       # (B, S, 6H)
    xproj = jnp.transpose(xproj, (1, 0, 2)).astype(jnp.float32)      # (S, B, 6H)

    # Block-diagonal recurrent weight so ONE matmul per step serves both
    # directions: rows 0:H act on h_fwd, rows H:2H act on h_bwd.
    wf, wb = params["w_hh_f"], params["w_hh_b"]                      # (3H, H)
    Z = jnp.zeros((H, H), jnp.float32)
    whh_big = jnp.concatenate([
        jnp.concatenate([wf[0:H].T, Z, wf[H:2 * H].T, Z, wf[2 * H:3 * H].T, Z], axis=1),
        jnp.concatenate([Z, wb[0:H].T, Z, wb[H:2 * H].T, Z, wb[2 * H:3 * H].T], axis=1),
    ], axis=0)                                                       # (2H, 6H)

    bf, bb = params["b_hh_f"], params["b_hh_b"]                      # (3H,)
    bhh_big = jnp.concatenate(
        [bf[0:H], bb[0:H], bf[H:2 * H], bb[H:2 * H],
         bf[2 * H:3 * H], bb[2 * H:3 * H]])[None, :]                 # (1, 6H)

    lens2d = lengths.astype(jnp.int32).reshape(-1, 1)                # (B, 1)

    return _bigru_head(xproj, lens2d, whh_big, bhh_big)


# ----------------------- pure-JAX reference (for checking) -------------------

def _gru_cell(x, h, w_ih, w_hh, b_ih, b_hh, H):
    gi = x @ w_ih.T + b_ih
    gh = h @ w_hh.T + b_hh
    r = jax.nn.sigmoid(gi[:, 0:H] + gh[:, 0:H])
    z = jax.nn.sigmoid(gi[:, H:2 * H] + gh[:, H:2 * H])
    n = jnp.tanh(gi[:, 2 * H:3 * H] + r * gh[:, 2 * H:3 * H])
    return (1.0 - z) * n + z * h


def encoder_reference(params, inputs, lengths):
    emb = jnp.take(params["emb"], inputs, axis=0)
    B, S, _ = emb.shape
    H = params["w_hh_f"].shape[1]
    h_f = jnp.zeros((B, H), jnp.float32)
    h_b = jnp.zeros((B, H), jnp.float32)
    for t in range(S):            # forward direction, packed semantics
        upd = _gru_cell(emb[:, t], h_f, params["w_ih_f"], params["w_hh_f"],
                        params["b_ih_f"], params["b_hh_f"], H)
        h_f = jnp.where((t < lengths)[:, None], upd, h_f)
    for t in range(S - 1, -1, -1):  # backward direction, packed semantics
        upd = _gru_cell(emb[:, t], h_b, params["w_ih_b"], params["w_hh_b"],
                        params["b_ih_b"], params["b_hh_b"], H)
        h_b = jnp.where((t < lengths)[:, None], upd, h_b)
    return jnp.concatenate([h_f, h_b], axis=-1)


# --------------------------------- params ------------------------------------

def init_params(key, vocab, embed_dim, hidden):
    ks = jax.random.split(key, 9)
    bound = 1.0 / (hidden ** 0.5)

    def u(k, shape):
        return jax.random.uniform(k, shape, jnp.float32, -bound, bound)

    return {
        "emb": jax.random.normal(ks[0], (vocab, embed_dim), jnp.float32),
        # forward direction (PyTorch layout: (3H, E)/(3H, H), gates [r, z, n])
        "w_ih_f": u(ks[1], (3 * hidden, embed_dim)),
        "w_hh_f": u(ks[2], (3 * hidden, hidden)),
        "b_ih_f": u(ks[3], (3 * hidden,)),
        "b_hh_f": u(ks[4], (3 * hidden,)),
        # reverse direction
        "w_ih_b": u(ks[5], (3 * hidden, embed_dim)),
        "w_hh_b": u(ks[6], (3 * hidden, hidden)),
        "b_ih_b": u(ks[7], (3 * hidden,)),
        "b_hh_b": u(ks[8], (3 * hidden,)),
    }


if __name__ == "__main__":
    key = jax.random.PRNGKey(0)
    k_param, k_tok = jax.random.split(key)

    VOCAB, EMBED, HIDDEN = 32, 16, 64   # hidden_size=64 is the module default
    B, S = 4, 8

    params = init_params(k_param, VOCAB, EMBED, HIDDEN)
    inputs = jax.random.randint(k_tok, (B, S), 0, VOCAB, dtype=jnp.int32)
    lengths = jnp.array([8, 5, 3, 6], dtype=jnp.int32)   # variable lengths

    out = encoder_forward(params, inputs, lengths)
    out = jax.block_until_ready(out)

    assert out.shape == (B, 2 * HIDDEN) and out.dtype == jnp.float32

    ref = encoder_reference(params, inputs, lengths)
    err = float(jnp.max(jnp.abs(out - ref)))
    assert err < 1e-3, f"mismatch vs pure-JAX reference: {err}"

    print("KERNEL_OK")
</pallas_src>

<mosaic_0001>
module attributes {stable_mosaic.version = 11 : i64} {
  func.func @_bigru_final_state_kernel(%arg0: memref<8x4x384xf32, #tpu.memory_space<vmem>>, %arg1: memref<4x1xi32, #tpu.memory_space<vmem>>, %arg2: memref<128x384xf32, #tpu.memory_space<vmem>>, %arg3: memref<1x384xf32, #tpu.memory_space<vmem>>, %arg4: memref<4x128xf32, #tpu.memory_space<vmem>>) attributes {dimension_semantics = [], scalar_prefetch = 0 : i64, scratch_operands = 0 : i64, tpu.core_type = #tpu.core_type<tc>} {
    %c0 = arith.constant 0 : index
    %c0_0 = arith.constant 0 : index
    %0 = vector.load %arg1[%c0, %c0_0] : memref<4x1xi32, #tpu.memory_space<vmem>>, vector<4x1xi32>
    %1 = tpu.iota {dimensions = array<i32: 1>} : vector<4x128xi32>
    %c64_i32 = arith.constant 64 : i32
    %2 = vector.broadcast %c64_i32 : i32 to vector<4x128xi32>
    %3 = arith.cmpi slt, %1, %2 : vector<4x128xi32>
    %c8_i32 = arith.constant 8 : i32
    %4 = vector.broadcast %c8_i32 : i32 to vector<4x1xi32>
    %5 = arith.subi %4, %0 : vector<4x1xi32>
    %c0_i32 = arith.constant 0 : i32
    %6 = vector.broadcast %c0_i32 : i32 to vector<4x128xi32>
    %7 = vector.shape_cast %5 : vector<4x1xi32> to vector<4x1xi32>
    %8 = vector.broadcast %7 : vector<4x1xi32> to vector<4x128xi32>
    %9 = arith.select %3, %6, %8 : vector<4x128xi1>, vector<4x128xi32>
    %c8_i32_1 = arith.constant 8 : i32
    %10 = vector.shape_cast %0 : vector<4x1xi32> to vector<4x1xi32>
    %11 = vector.broadcast %10 : vector<4x1xi32> to vector<4x128xi32>
    %12 = vector.broadcast %c8_i32_1 : i32 to vector<4x128xi32>
    %13 = arith.select %3, %11, %12 : vector<4x128xi1>, vector<4x128xi32>
    %c0_2 = arith.constant 0 : index
    %c0_3 = arith.constant 0 : index
    %14 = vector.load %arg2[%c0_2, %c0_3] : memref<128x384xf32, #tpu.memory_space<vmem>>, vector<128x384xf32>
    %c0_4 = arith.constant 0 : index
    %c0_5 = arith.constant 0 : index
    %15 = vector.load %arg3[%c0_4, %c0_5] : memref<1x384xf32, #tpu.memory_space<vmem>>, vector<1x384xf32>
    %cst = arith.constant 0.000000e+00 : f32
    %16 = vector.broadcast %cst : f32 to vector<4x128xf32>
    %c0_i32_6 = arith.constant 0 : i32
    %c8_i32_7 = arith.constant 8 : i32
    %17 = arith.addi %c0_i32_6, %c8_i32_7 : i32
    %c1_i32 = arith.constant 1 : i32
    %18 = scf.for %arg5 = %c0_i32_6 to %17 step %c1_i32 iter_args(%arg6 = %16) -> (vector<4x128xf32>)  : i32 {
      %20 = arith.index_cast %arg5 : i32 to index
      %c0_11 = arith.constant 0 : index
      %c0_12 = arith.constant 0 : index
      %21 = vector.load %arg0[%20, %c0_11, %c0_12] : memref<8x4x384xf32, #tpu.memory_space<vmem>>, vector<1x4x384xf32>
      %22 = vector.shape_cast %21 : vector<1x4x384xf32> to vector<4x384xf32>
      %cst_13 = arith.constant dense<0.000000e+00> : vector<4x384xf32>
      %23 = tpu.matmul %arg6, %14, %cst_13 {dimension_numbers = #tpu.dot_dimension_numbers<[1], [0], [0], [1], [0, 0, 1, 1], [], []>} : vector<4x128xf32>, vector<128x384xf32>, vector<4x384xf32> -> vector<4x384xf32>
      %24 = vector.broadcast %15 : vector<1x384xf32> to vector<4x384xf32>
      %25 = arith.addf %23, %24 : vector<4x384xf32>
      %26 = vector.extract_strided_slice %22 {offsets = [0, 0], sizes = [4, 128], strides = [1, 1]} : vector<4x384xf32> to vector<4x128xf32>
      %27 = vector.extract_strided_slice %25 {offsets = [0, 0], sizes = [4, 128], strides = [1, 1]} : vector<4x384xf32> to vector<4x128xf32>
      %28 = arith.addf %26, %27 : vector<4x128xf32>
      %29 = arith.negf %28 : vector<4x128xf32>
      %30 = math.exp %29 : vector<4x128xf32>
      %cst_14 = arith.constant 1.000000e+00 : f32
      %31 = vector.broadcast %cst_14 : f32 to vector<4x128xf32>
      %32 = arith.addf %31, %30 : vector<4x128xf32>
      %33 = arith.divf %31, %32 : vector<4x128xf32>
      %34 = vector.extract_strided_slice %22 {offsets = [0, 128], sizes = [4, 128], strides = [1, 1]} : vector<4x384xf32> to vector<4x128xf32>
      %35 = vector.extract_strided_slice %25 {offsets = [0, 128], sizes = [4, 128], strides = [1, 1]} : vector<4x384xf32> to vector<4x128xf32>
      %36 = arith.addf %34, %35 : vector<4x128xf32>
      %37 = arith.negf %36 : vector<4x128xf32>
      %38 = math.exp %37 : vector<4x128xf32>
      %cst_15 = arith.constant 1.000000e+00 : f32
      %39 = vector.broadcast %cst_15 : f32 to vector<4x128xf32>
      %40 = arith.addf %39, %38 : vector<4x128xf32>
      %41 = arith.divf %39, %40 : vector<4x128xf32>
      %42 = vector.extract_strided_slice %22 {offsets = [0, 256], sizes = [4, 128], strides = [1, 1]} : vector<4x384xf32> to vector<4x128xf32>
      %43 = vector.extract_strided_slice %25 {offsets = [0, 256], sizes = [4, 128], strides = [1, 1]} : vector<4x384xf32> to vector<4x128xf32>
      %44 = arith.mulf %33, %43 : vector<4x128xf32>
      %45 = arith.addf %42, %44 : vector<4x128xf32>
      %46 = math.tanh %45 : vector<4x128xf32>
      %cst_16 = arith.constant 1.000000e+00 : f32
      %47 = vector.broadcast %cst_16 : f32 to vector<4x128xf32>
      %48 = arith.subf %47, %41 : vector<4x128xf32>
      %49 = arith.mulf %48, %46 : vector<4x128xf32>
      %50 = arith.mulf %41, %arg6 : vector<4x128xf32>
      %51 = arith.addf %49, %50 : vector<4x128xf32>
      %52 = vector.broadcast %arg5 : i32 to vector<4x128xi32>
      %53 = arith.cmpi sge, %52, %9 : vector<4x128xi32>
      %54 = vector.broadcast %arg5 : i32 to vector<4x128xi32>
      %55 = arith.cmpi slt, %54, %13 : vector<4x128xi32>
      %56 = arith.andi %53, %55 : vector<4x128xi1>
      %57 = arith.select %56, %51, %arg6 : vector<4x128xi1>, vector<4x128xf32>
      scf.yield %57 : vector<4x128xf32>
    }
    %c8_i32_8 = arith.constant 8 : i32
    %c0_9 = arith.constant 0 : index
    %c0_10 = arith.constant 0 : index
    %19 = vector.load %arg4[%c0_9, %c0_10] : memref<4x128xf32, #tpu.memory_space<vmem>>, vector<4x128xf32>
    tpu.vector_store %arg4[%c0_9, %c0_10], %18 {strides = array<i32>} : memref<4x128xf32, #tpu.memory_space<vmem>>, vector<4x128xf32>,
    return
  }
}

</mosaic_0001>

<bundles_post_ra>
// kernel: encoder_forward.1
= control target key start
LH: loop header
LB: loop body
LE: loop exit
PB: predicated region body
PF: predicated region fallthrough
CT: control target
= control target key end

     0   :  { %s860_s0 = inlined_call_operand.vmem [shape: f32[8,4,384], index: 0, kind: input, shape index: {}]   ;;  %s861_s1 = inlined_call_operand.vmem [shape: s32[4,1], index: 1, kind: input, shape index: {}]   ;;  %s862_s2 = inlined_call_operand.vmem [shape: f32[128,384], index: 2, kind: input, shape index: {}]   ;;  %s863_s3 = inlined_call_operand.vmem [shape: f32[1,384], index: 3, kind: input, shape index: {}]   ;;  %s864_s4 = inlined_call_operand.hbm [shape: f32[4,128], index: 4, kind: output, shape index: {}]  }
   0x1   :  { %v18_v0 = vld [vmem:[%s861_s1] sm:$0xf] }
   0x2   :  { %9 = vsyncpa [#allocation3], 0  ;;  %v487_v1 = vmov 0   ;;  %v22_v2 = vsub.s32 8, %v18_v0  ;;  %v523_v3 = vld [vmem:[%s862_s2] sm:$0xff]  ;;  %v528_v4 = vld [vmem:[%s862_s2 + $0x8] sm:$0xff]  ;;  %v865_v52 = vlaneseq }
   0x3   :  { %436 = vset.pattern.permute.xlu0 %v487_v1  ;;  %866 = vst [vmem:[#allocation5_spill] sm:$0xff] %v523_v3  ;;  %867 = vst [vmem:[#allocation6_spill] sm:$0xff] %v528_v4  ;;  %v533_v5 = vld [vmem:[%s862_s2 + $0x10] sm:$0xff]  ;;  %v538_v6 = vld [vmem:[%s862_s2 + $0x18] sm:$0xff]  ;;  %v770_v58 = vmov 0.0   ;;  %s772_s7 = smov 0  }
   0x4   :  { %24 = vperm.xlu0 %436, %v22_v2   ;;  %868 = vst [vmem:[#allocation7_spill] sm:$0xff] %v533_v5  ;;  %869 = vst [vmem:[#allocation8_spill] sm:$0xff] %v538_v6  ;;  %v543_v7 = vld [vmem:[%s862_s2 + $0x20] sm:$0xff]  ;;  %v548_v8 = vld [vmem:[%s862_s2 + $0x28] sm:$0xff]  ;;  %v20_v53 = vand.u32 127, %v865_v52 }
   0x5   :  { %870 = vst [vmem:[#allocation9_spill] sm:$0xff] %v543_v7  ;;  %871 = vst [vmem:[#allocation10_spill] sm:$0xff] %v548_v8  ;;  %v553_v9 = vld [vmem:[%s862_s2 + $0x30] sm:$0xff]  ;;  %v558_v10 = vld [vmem:[%s862_s2 + $0x38] sm:$0xff] }
   0x6   :  { %872 = vst [vmem:[#allocation11_spill] sm:$0xff] %v553_v9  ;;  %873 = vst [vmem:[#allocation12_spill] sm:$0xff] %v558_v10  ;;  %v563_v11 = vld [vmem:[%s862_s2 + $0x40] sm:$0xff]  ;;  %v568_v12 = vld [vmem:[%s862_s2 + $0x48] sm:$0xff]  ;;  %vm21_vm0 = vcmp.lt.s32.totalorder %v20_v53, 64 }
   0x7   :  { %v573_v13 = vld [vmem:[%s862_s2 + $0x50] sm:$0xff]  ;;  %v578_v14 = vld [vmem:[%s862_s2 + $0x58] sm:$0xff]  ;;  %v583_v15 = vld [vmem:[%s862_s2 + $0x60] sm:$0xff] }
   0x8   :  { %28 = vperm.xlu0 %436, %v18_v0   ;;  %v588_v16 = vld [vmem:[%s862_s2 + $0x68] sm:$0xff]  ;;  %v593_v17 = vld [vmem:[%s862_s2 + $0x70] sm:$0xff]  ;;  %v598_v18 = vld [vmem:[%s862_s2 + $0x78] sm:$0xff] }
   0x9   :  { %v603_v19 = vld [vmem:[%s862_s2 + $0x80] sm:$0xff]  ;;  %v608_v20 = vld [vmem:[%s862_s2 + $0x88] sm:$0xff]  ;;  %v613_v21 = vld [vmem:[%s862_s2 + $0x90] sm:$0xff] }
   0xa   :  { %v618_v22 = vld [vmem:[%s862_s2 + $0x98] sm:$0xff]  ;;  %v623_v23 = vld [vmem:[%s862_s2 + $0xa0] sm:$0xff]  ;;  %v628_v24 = vld [vmem:[%s862_s2 + $0xa8] sm:$0xff] }
   0xb   :  { %v633_v25 = vld [vmem:[%s862_s2 + $0xb0] sm:$0xff]  ;;  %v638_v26 = vld [vmem:[%s862_s2 + $0xb8] sm:$0xff]  ;;  %v643_v27 = vld [vmem:[%s862_s2 + $0xc0] sm:$0xff] }
   0xc   :  { %v648_v28 = vld [vmem:[%s862_s2 + $0xc8] sm:$0xff]  ;;  %v653_v29 = vld [vmem:[%s862_s2 + $0xd0] sm:$0xff]  ;;  %v658_v30 = vld [vmem:[%s862_s2 + $0xd8] sm:$0xff] }
   0xd   :  { %v663_v31 = vld [vmem:[%s862_s2 + $0xe0] sm:$0xff]  ;;  %v668_v32 = vld [vmem:[%s862_s2 + $0xe8] sm:$0xff]  ;;  %v673_v33 = vld [vmem:[%s862_s2 + $0xf0] sm:$0xff] }
   0xe   :  { %v678_v34 = vld [vmem:[%s862_s2 + $0xf8] sm:$0xff]  ;;  %v683_v35 = vld [vmem:[%s862_s2 + $0x100] sm:$0xff]  ;;  %v688_v36 = vld [vmem:[%s862_s2 + $0x108] sm:$0xff] }
   0xf   :  { %v693_v37 = vld [vmem:[%s862_s2 + $0x110] sm:$0xff]  ;;  %v698_v38 = vld [vmem:[%s862_s2 + $0x118] sm:$0xff]  ;;  %v703_v39 = vld [vmem:[%s862_s2 + $0x120] sm:$0xff] }
  0x10   :  { %v708_v40 = vld [vmem:[%s862_s2 + $0x128] sm:$0xff]  ;;  %v713_v41 = vld [vmem:[%s862_s2 + $0x130] sm:$0xff]  ;;  %v718_v42 = vld [vmem:[%s862_s2 + $0x138] sm:$0xff] }
  0x11   :  { %v723_v43 = vld [vmem:[%s862_s2 + $0x140] sm:$0xff]  ;;  %v728_v44 = vld [vmem:[%s862_s2 + $0x148] sm:$0xff]  ;;  %v733_v45 = vld [vmem:[%s862_s2 + $0x150] sm:$0xff] }
  0x12   :  { %v738_v46 = vld [vmem:[%s862_s2 + $0x158] sm:$0xff]  ;;  %v743_v47 = vld [vmem:[%s862_s2 + $0x160] sm:$0xff]  ;;  %v748_v48 = vld [vmem:[%s862_s2 + $0x168] sm:$0xff] }
  0x13   :  { %v753_v49 = vld [vmem:[%s862_s2 + $0x170] sm:$0xff]  ;;  %v758_v50 = vld [vmem:[%s862_s2 + $0x178] sm:$0xff]  ;;  %v763_v51 = vld [vmem:[%s863_s3] sm:$0x7] }
  0x83   :  { %v25_v54 = vpop.permute.xlu0 %24 }
  0x84   :  { %v766_v55 = vsel %vm21_vm0, 0, %v25_v54 }
  0x87   :  { %v29_v56 = vpop.permute.xlu0 %28 }
  0x88   :  { %v768_v57 = vsel %vm21_vm0, %v29_v56, 8 }
  0x89 LB: > { %v874_v4 = vld [vmem:[#allocation6_spill] sm:$0xff]  ;;  %v875_v7 = vld [vmem:[#allocation9_spill] sm:$0xff]  ;;  %v877_v6 = vld [vmem:[#allocation8_spill] sm:$0xff]  ;;  %v367_v63 = vpack.c.bf16 %v603_v19, %v588_v16  ;;  %v488_v0 = vmov 0.0|0.0   ;;  %v489_v2 = vmov 0.0   ;;  %v395_v53 = vpack.c.bf16 %v578_v14, %v563_v11  ;;  %s306_s2 = smul.u32 12, %s485_s7  ;;  %s485_s7 = sphi %s772_s7, %s85_s7   ;;  %v481_v58 = vphi %v770_v58, %v883_v58  }
  0x8a   : > { %v359_v59 = vpack.c.bf16 %v875_v7, %v874_v4  ;;  %v876_v3 = vld [vmem:[#allocation5_spill] sm:$0xff]  ;;  %v878_v10 = vld [vmem:[#allocation12_spill] sm:$0xff]  ;;  %v879_v9 = vld [vmem:[#allocation11_spill] sm:$0xff]  ;;  %391 = vmatprep.subr.bf16.mxu1 %v488_v0  ;;  %172 = vmatprep.mubr.f32.mxu0 %v489_v2  ;;  %v369_v54 = vpack.c.bf16 %v598_v18, %v583_v15  ;;  %v371_v56 = vpack.c.bf16 %v633_v25, %v618_v22  ;;  %vm490_vm1 = vmmov 0  }
  0x8b   : > { %v361_v60 = vpack.c.bf16 %v877_v6, %v876_v3  ;;  %v363_v61 = vpack.c.bf16 %v573_v13, %v878_v10  ;;  %v365_v62 = vpack.c.bf16 %v568_v12, %v879_v9  ;;  %v880_v5 = vld [vmem:[#allocation7_spill] sm:$0xff]  ;;  %v881_v8 = vld [vmem:[#allocation10_spill] sm:$0xff]  ;;  %356 = vmatprep.mubr.msk.f32.mxu1 %vm490_vm1, %v489_v2  ;;  %v404_v2 = vpack.c.bf16 %v668_v32, %v653_v29  ;;  %s89_s9 = scalar_lea.vmem %s860_s0, %s306_s2 }
  0x8c   : > { %360 = vmatprep.subr.bf16.mxu0 %v359_v59  ;;  %v392_v1 = vpack.c.bf16 %v881_v8, %v880_v5  ;;  %v398_v59 = vpack.c.bf16 %v608_v20, %v593_v17  ;;  %v882_v52 = vlaneseq }
  0x8d   : > { %362 = vmatpush1.bf16.msra.mxu0 %v361_v60  ;;  %v373_v60 = vpack.c.bf16 %v628_v24, %v613_v21 }
  0x8e   : > { %364 = vmatprep.subr.bf16.mxu0 %v363_v61  ;;  %393 = vmatpush3.bf16.msra.mxu1 %v392_v1  ;;  %v375_v61 = vpack.c.bf16 %v663_v31, %v648_v28  ;;  %v379_v1 = vpack.c.bf16 %v693_v37, %v678_v34 }
  0x8f   : > { %394 = vmatprep.subr.bf16.mxu1 %v488_v0 }
  0x91   : > { %366 = vmatpush1.bf16.msra.mxu0 %v365_v62  ;;  %v401_v62 = vpack.c.bf16 %v638_v26, %v623_v23 }
  0x92   : > { %368 = vmatprep.subr.bf16.mxu0 %v367_v63  ;;  %396 = vmatpush3.bf16.msra.mxu1 %v395_v53  ;;  %v377_v63 = vpack.c.bf16 %v658_v30, %v643_v27  ;;  %v381_v53 = vpack.c.bf16 %v688_v36, %v673_v33 }
  0x93   : > { %397 = vmatprep.subr.bf16.mxu1 %v488_v0 }
  0x95   : > { %370 = vmatpush1.bf16.msra.mxu0 %v369_v54  ;;  %v383_v54 = vpack.c.bf16 %v723_v43, %v708_v40 }
  0x96   : > { %372 = vmatprep.subr.bf16.mxu0 %v371_v56  ;;  %399 = vmatpush3.bf16.msra.mxu1 %v398_v59  ;;  %v407_v56 = vpack.c.bf16 %v698_v38, %v683_v35  ;;  %v385_v59 = vpack.c.bf16 %v718_v42, %v703_v39 }
  0x97   : > { %400 = vmatprep.subr.bf16.mxu1 %v488_v0 }
  0x99   : > { %374 = vmatpush1.bf16.msra.mxu0 %v373_v60  ;;  %v387_v60 = vpack.c.bf16 %v753_v49, %v738_v46 }
  0x9a   : > { %376 = vmatprep.subr.bf16.mxu0 %v375_v61  ;;  %402 = vmatpush3.bf16.msra.mxu1 %v401_v62  ;;  %v410_v61 = vpack.c.bf16 %v728_v44, %v713_v41  ;;  %v389_v62 = vpack.c.bf16 %v748_v48, %v733_v45 }
  0x9b   : > { %403 = vmatprep.subr.bf16.mxu1 %v488_v0 }
  0x9d   : > { %378 = vmatpush1.bf16.msra.mxu0 %v377_v63  ;;  %v413_v63 = vpack.c.bf16 %v758_v50, %v743_v47 }
  0x9e   : > { %380 = vmatprep.subr.bf16.mxu0 %v379_v1  ;;  %405 = vmatpush3.bf16.msra.mxu1 %v404_v2  ;;  %v94_v1 = vshrl.u32 %v882_v52, 7 }
  0x9f   : > { %406 = vmatprep.subr.bf16.mxu1 %v488_v0 }
  0xa0   : > { %v95_v2 = vsub.s32 0, %v94_v1 }
  0xa1   : > { %382 = vmatpush1.bf16.msra.mxu0 %v381_v53  ;;  %v99_v53 = vsub.s32 1, %v94_v1 }
  0xa2   : > { %384 = vmatprep.subr.bf16.mxu0 %v383_v54  ;;  %408 = vmatpush3.bf16.msra.mxu1 %v407_v56  ;;  %v96_v54 = vrot.slane %v763_v51, %v95_v2  ;;  %v103_v2 = vsub.s32 2, %v94_v1 }
  0xa3   : > { %409 = vmatprep.subr.bf16.mxu1 %v488_v0  ;;  %v100_v56 = vrot.slane %v763_v51, %v99_v53 }
  0xa4   : > { %v104_v53 = vrot.slane %v763_v51, %v103_v2 }
  0xa5   : > { %386 = vmatpush1.bf16.msra.mxu0 %v385_v59  ;;  %v90_v59 = vld [vmem:[%s89_s9] sm:$0xff] }
  0xa6   : > { %388 = vmatprep.subr.bf16.mxu0 %v387_v60  ;;  %411 = vmatpush3.bf16.msra.mxu1 %v410_v61 }
  0xa7   : > { %412 = vmatprep.subr.bf16.mxu1 %v488_v0 }
  0xa9   : > { %390 = vmatpush1.bf16.msra.mxu0 %v389_v62 }
  0xaa   : > { %414 = vmatpush3.bf16.msra.mxu1 %v413_v63  ;;  %v257_v63 = vrot.slane %v90_v59, 4 }
  0xac   : > { %173 = vmatmul.mubr.f32.vlgmr.msra.gmra.mrb[0].mxu0 %v481_v58 }
  0xad   : > { %357 = vmatmul.mubr.f32.vlgmr.msra.gmra.mrb[0].mxu1 %v481_v58 }
 0x17f   : > { %v174_v0 = vpop.f32.mrb[0].mxu0 }
 0x180   : > { %v175_v60 = vadd.f32 %v174_v0, %v96_v54  ;;  %v176_v61 = vpop.f32.mrb[1].mxu0  ;;  %v245_v4 = vpop.f32.mrb[0].mxu1 }
 0x181   : > { %v177_v62 = vadd.f32 %v176_v61, %v100_v56  ;;  %v358_v52 = vpop.f32.mrb[1].mxu1  ;;  %v246_v0 = vadd.f32 %v245_v4, %v104_v53  ;;  %v91_v61 = vld [vmem:[%s89_s9 + $0x8] sm:$0xf] }
 0x182   : > { %v249_v3 = vadd.f32 %v175_v60, %v90_v59 }
 0x183   : > { %v259_v6 = vadd.f32 %v257_v63, %v177_v62 }
 0x184   : > { %v304_v5 = vmul.f32 -1.442695, %v249_v3 }
 0x185   : > { %v305_v7 = vmul.f32 -1.442695, %v259_v6 }
 0x186   : > { %437 = vpow2.f32 %v304_v5  ;;  %v273_v5 = vstv %s485_s7  ;;  %s85_s7 = sadd.s32 1, %s485_s7  }
 0x187   : > { %439 = vpow2.f32 %v305_v7  ;;  %vm274_vm2 = vcmp.ge.s32.totalorder %v273_v5, %v766_v55  ;;  %vm275_vm3 = vcmp.lt.s32.totalorder %v273_v5, %v768_v57  ;;  %p82_p0 = scmp.ge.s32.totalorder %s85_s7, 8  }
 0x188   : > { %vm276_vm4 = vmand %vm274_vm2, %vm275_vm3  ;;  %s491_s10 = smov (%p82_p0), [#allocation2]  }
 0x189   :  { %s285_s11 = sshll.u32 (%p82_p0), %s491_s10, 4  ;;  %s286_s11 = int_to_ptr.vmem [resolvable:$true] %s285_s11 }
 0x18a   :  { %s447_s12 = scalar_lea.vmem (%p82_p0), %s286_s11, 64  ;;  %p452_p2 = scmp.lt.s32.totalorder (%p82_p0), %s286_s11, %s286_s11 }
 0x18b   :  { %p448_p1 = scmp.ne.s32.totalorder (%p82_p0), %s286_s11, %s447_s12  ;;  %p453_p3 = scmp.lt.s32.totalorder (%p82_p0), %s447_s12, %s447_s12 }
 0x18d   :  { %p454_p4 = por (%p82_p0), %p453_p3, %p452_p2 }
 0x18f   :  { %p455_p5 = pnand (%p82_p0), %p454_p4, %p448_p1 }
 0x190   : > { %v438_v8 = vpop.eup %437 }
 0x191   : > { %v253_v9 = vadd.f32 1.0, %v438_v8  ;;  %v440_v10 = vpop.eup %439 }
 0x192   : > { %v263_v54 = vadd.f32 1.0, %v440_v10 }
 0x193   : > { %441 = vrcp.f32 %v253_v9 }
 0x194   : > { %443 = vrcp.f32 %v263_v54 }
 0x19d   : > { %v442_v56 = vpop.eup %441 }
 0x19e   : > { %v266_v59 = vmul.f32 %v442_v56, %v246_v0  ;;  %v444_v3 = vpop.eup %443 }
 0x19f   : > { %v269_v6 = vsub.f32 1.0, %v444_v3  ;;  %v271_v8 = vmul.f32 %v481_v58, %v444_v3 }
 0x1a0   : > { %v267_v52 = vadd.f32 %v266_v59, %v91_v61 }
 0x1a2   : > { %445 = vtanh.f32 %v267_v52 }
 0x1ac   : > { %v446_v7 = vpop.eup %445  ;;  %84 = sbr.rel (!%p82_p0) target bundleno = 137 (0x89), region = 44 }
 0x1ad   : > { %v270_v9 = vmul.f32 %v446_v7, %v269_v6 }
 0x1af   : > { %v272_v10 = vadd.f32 %v271_v8, %v270_v9 }
 0x1b1   : > { %v277_v4 = vsel %vm276_vm4, %v272_v10, %v481_v58  }
 0x1b2   : > { %v883_v58 = vmov %v277_v4  ;;  %278 = vst [vmem:[#allocation2] sm:$0xf] (%p82_p0), %v277_v4 }
 0x1b3   :  { %458 = shalt.err (!%p455_p5)
}
 0x1b4   :  { %s459_s15 = scalar_lea.hbm %s864_s4, 64 }
 0x1b5   :  { %p460_p6 = scmp.ne.s32.totalorder %s864_s4, %s459_s15  ;;  %p463_p7 = scmp.lt.u32.totalorder %s459_s15, %s864_s4 }
 0x1b7   :  { %p465_p8 = pnand %p463_p7, %p460_p6 }
 0x1b9   :  { %468 = shalt.err (!%p465_p8)
}
 0x1ba   :  { %288 = dma.vmem_to_hbm [thread:$0]  %s286_s11, 64, %s864_s4, [#allocation3]  }
 0x1bb   :  { %477 = dma.done.wait [#allocation3], 64  }
 0x1bc   :  { %478 = vsyncadd [#allocation3], 4294967232 }
 0x1bd   :  { %292 = vsyncpa [#allocation3], 1 }

</bundles_post_ra>
